<compile_context>
chip_gen: v7x
topology: tpu7x:2x2x1
jax: 0.10.0
libtpu: 0.0.40
codegen_flags: <defaults>
</compile_context>

<pallas_src>
import numpy as np
import jax
import jax.numpy as jnp
from jax.experimental import pallas as pl
from jax.experimental.pallas import tpu as pltpu


# ---------------------------------------------------------------------------
# Kernel
# ---------------------------------------------------------------------------
def _cone_swap_kernel(y_ref, e_ref, o_ref):
    """y_ref: (B,) int32 scalar-prefetch (SMEM); e_ref/o_ref: (1, TR, H) VMEM."""
    label = y_ref[pl.program_id(0)]              # tile-constant label scalar
    e = e_ref[0]                                 # (TR, H) Exp(1) draws, all >= 0
    tr, h_dim = e.shape

    cols = jax.lax.broadcasted_iota(jnp.int32, (tr, h_dim), 1)

    # --- XLU: row max + first-occurrence argmax (must stay on the XLU). -----
    m_e = jnp.max(e, axis=-1, keepdims=True)
    idx = jnp.min(jnp.where(e == m_e, cols, h_dim), axis=-1, keepdims=True)

    # --- MXU offload: row L1 norm (col 0 = ones) and label-column pick ------
    # (col 1 = one_hot(label)) in a single small matmul on the idle MXU.
    r_row = jax.lax.broadcasted_iota(jnp.int32, (h_dim, 128), 0)
    r_col = jax.lax.broadcasted_iota(jnp.int32, (h_dim, 128), 1)
    rhs = jnp.where(
        r_col == 0, 1.0,
        jnp.where((r_col == 1) & (r_row == label), 1.0, 0.0),
    ).astype(jnp.float32)
    picked = jnp.dot(
        e, rhs,
        preferred_element_type=jnp.float32,
        precision=jax.lax.Precision.HIGHEST,
    )                                            # (TR, 128)
    row_sum = picked[:, 0:1]                     # ||e||_1 per row (e >= 0)
    lbl_e = picked[:, 1:2]                       # e[:, label]

    inv = 1.0 / row_sum                          # exact per-row reciprocal
    label_mask = cols == label                   # built once, reused (no CSE)
    swapped = jnp.where(label_mask, m_e, jnp.where(cols == idx, lbl_e, e))
    o_ref[0] = (swapped * inv).astype(o_ref.dtype)


# ---------------------------------------------------------------------------
# Tiling / wrapper
# ---------------------------------------------------------------------------
def _pick_sample_tile(sample_size, h_dim, n_batch):
    """Samples-per-tile: big enough to amortize per-step overhead, small enough
    that (double-buffered in/out + ~6 live tile temporaries), with 128-lane
    padding when H < 128, fits comfortably under a 32 MiB scoped-VMEM limit on
    every generation (v7x has only 64 MiB total per TensorCore)."""
    padded_row_bytes = pl.cdiv(h_dim, 128) * 128 * 4
    live_tiles = 2 * 2 + 6                        # in/out double buffers + temps
    budget = 24 * 1024 * 1024                     # headroom under the 32 MiB limit
    cap = max(8, budget // (live_tiles * padded_row_bytes))
    cap = min(cap, 2048)
    cap -= cap % 8
    # v7x megacore: with a single batch row, split S so the grid has >= 2 steps.
    if n_batch == 1 and sample_size > 8:
        cap = min(cap, max(8, (((sample_size + 1) // 2) + 7) // 8 * 8))
    if sample_size <= cap:
        return sample_size                        # full dim -> always legal
    for t in range(cap, 7, -8):                   # largest multiple-of-8 divisor
        if sample_size % t == 0:
            return t
    return cap                                    # fallback: masked last block


def cone_swap_normalize(exp_samples, y):
    """Swap/normalize math of CorrectConeSampling on explicit Exp(1) draws."""
    n_batch, sample_size, h_dim = exp_samples.shape
    tr = _pick_sample_tile(sample_size, h_dim, n_batch)
    grid = (n_batch, pl.cdiv(sample_size, tr))
    n_elem = n_batch * sample_size * h_dim
    return pl.pallas_call(
        _cone_swap_kernel,
        out_shape=jax.ShapeDtypeStruct((n_batch, sample_size, h_dim), jnp.float32),
        grid_spec=pltpu.PrefetchScalarGridSpec(
            num_scalar_prefetch=1,
            grid=grid,
            in_specs=[pl.BlockSpec((1, tr, h_dim), lambda b, s, y_pref: (b, s, 0))],
            out_specs=pl.BlockSpec((1, tr, h_dim), lambda b, s, y_pref: (b, s, 0)),
        ),
        compiler_params=pltpu.CompilerParams(
            dimension_semantics=("parallel", "parallel"),
            vmem_limit_bytes=32 * 1024 * 1024,
        ),
        cost_estimate=pl.CostEstimate(
            flops=n_elem * 8 + n_elem * 4,        # VPU/XLU work + MXU offload
            transcendentals=0,
            bytes_accessed=2 * n_elem * 4 + n_batch * 4,
        ),
    )(y.astype(jnp.int32), exp_samples.astype(jnp.float32))


def correct_cone_sampling(x, y, model, h_dim, sample_size, *, key):
    """Pallas equivalent of CorrectConeSampling.forward(x, y, model, h_dim, sample_size)."""
    del model                                     # unused by the original forward
    n_batch = x.shape[0]
    e = jax.random.exponential(key, (n_batch, sample_size, h_dim), dtype=jnp.float32)
    return cone_swap_normalize(e, y)


# ---------------------------------------------------------------------------
# Reference + test
# ---------------------------------------------------------------------------
def _reference(e, y):
    """Pure numpy replica of the PyTorch forward (given the same Exp(1) draws)."""
    e = np.asarray(e, dtype=np.float64)
    h = e / e.sum(-1, keepdims=True)
    m = h.max(-1)
    idx = h.argmax(-1)
    b_n, s_n, _ = e.shape
    out = h.copy()
    for b in range(b_n):
        for s in range(s_n):
            lbl = out[b, s, y[b]]
            out[b, s, y[b]] = m[b, s]
            out[b, s, idx[b, s]] = lbl
    return out.astype(np.float32)


if __name__ == "__main__":
    B, S, H = 2, 8, 32            # batch, sample_size, h_dim
    key = jax.random.PRNGKey(0)
    k_x, k_e, k_y = jax.random.split(key, 3)

    # x is only used for its batch dimension in the original module.
    x = jax.random.normal(k_x, (B, H), dtype=jnp.float32)
    y = jax.random.randint(k_y, (B,), 0, H, dtype=jnp.int32)

    out = jax.block_until_ready(
        correct_cone_sampling(x, y, model=None, h_dim=H, sample_size=S, key=k_e))
    assert out.shape == (B, S, H) and out.dtype == jnp.float32
    o = np.asarray(out)

    # Exact-draw validation: regenerate the same Exp(1) samples for the reference.
    e_np = np.asarray(jax.random.exponential(k_e, (B, S, H), dtype=jnp.float32))
    ref = _reference(e_np, np.asarray(y))
    np.testing.assert_allclose(o, ref, rtol=1e-5, atol=1e-6)

    # Structural invariants of the forward pass.
    assert np.all(np.isfinite(o)) and np.all(o >= 0.0)
    np.testing.assert_allclose(o.sum(-1), np.ones((B, S)), rtol=1e-5)
    lbl_vals = o[np.arange(B)[:, None], np.arange(S)[None, :], np.asarray(y)[:, None]]
    np.testing.assert_allclose(o.max(-1), lbl_vals, rtol=1e-6)

    print("KERNEL_OK")
</pallas_src>

<mosaic_0001>
module attributes {stable_mosaic.version = 11 : i64} {
  func.func @_cone_swap_kernel(%arg0: i32, %arg1: i32, %arg2: memref<2xi32, #tpu.memory_space<smem>>, %arg3: memref<1x8x32xf32, #tpu.memory_space<vmem>>, %arg4: memref<1x8x32xf32, #tpu.memory_space<vmem>>) attributes {dimension_semantics = [#tpu.dimension_semantics<parallel>, #tpu.dimension_semantics<parallel>], iteration_bounds = array<i64: 2, 1>, scalar_prefetch = 1 : i64, scratch_operands = 0 : i64, tpu.core_type = #tpu.core_type<tc>, window_params = [{transform_indices = @transform_0, window_bounds = array<i64: 1, 8, 32>}, {transform_indices = @transform_1, window_bounds = array<i64: 1, 8, 32>}]} {
    %0 = arith.index_cast %arg0 : i32 to index
    %1 = memref.load %arg2[%0] : memref<2xi32, #tpu.memory_space<smem>>
    %c0 = arith.constant 0 : index
    %c0_0 = arith.constant 0 : index
    %c0_1 = arith.constant 0 : index
    %2 = vector.load %arg3[%c0, %c0_0, %c0_1] : memref<1x8x32xf32, #tpu.memory_space<vmem>>, vector<1x8x32xf32>
    %3 = vector.shape_cast %2 : vector<1x8x32xf32> to vector<8x32xf32>
    %4 = tpu.iota {dimensions = array<i32: 1>} : vector<8x32xi32>
    %cst = arith.constant dense<0xFF800000> : vector<8xf32>
    %5 = vector.multi_reduction <maximumf>, %3, %cst [1] : vector<8x32xf32> to vector<8xf32>
    %6 = vector.shape_cast %5 : vector<8xf32> to vector<8x1xf32>
    %7 = vector.broadcast %6 : vector<8x1xf32> to vector<8x32xf32>
    %8 = arith.cmpf oeq, %3, %7 : vector<8x32xf32>
    %c32_i32 = arith.constant 32 : i32
    %9 = vector.broadcast %c32_i32 : i32 to vector<8x32xi32>
    %10 = arith.select %8, %4, %9 : vector<8x32xi1>, vector<8x32xi32>
    %cst_2 = arith.constant dense<2147483647> : vector<8xi32>
    %11 = vector.multi_reduction <minsi>, %10, %cst_2 [1] : vector<8x32xi32> to vector<8xi32>
    %12 = vector.shape_cast %11 : vector<8xi32> to vector<8x1xi32>
    %13 = tpu.iota {dimensions = array<i32: 0>} : vector<32x128xi32>
    %14 = tpu.iota {dimensions = array<i32: 1>} : vector<32x128xi32>
    %c0_i32 = arith.constant 0 : i32
    %15 = vector.broadcast %c0_i32 : i32 to vector<32x128xi32>
    %16 = arith.cmpi eq, %14, %15 : vector<32x128xi32>
    %c1_i32 = arith.constant 1 : i32
    %17 = vector.broadcast %c1_i32 : i32 to vector<32x128xi32>
    %18 = arith.cmpi eq, %14, %17 : vector<32x128xi32>
    %19 = vector.broadcast %1 : i32 to vector<32x128xi32>
    %20 = arith.cmpi eq, %13, %19 : vector<32x128xi32>
    %21 = arith.andi %18, %20 : vector<32x128xi1>
    %cst_3 = arith.constant 1.000000e+00 : f32
    %cst_4 = arith.constant 0.000000e+00 : f32
    %22 = vector.broadcast %cst_3 : f32 to vector<32x128xf32>
    %23 = vector.broadcast %cst_4 : f32 to vector<32x128xf32>
    %24 = arith.select %21, %22, %23 : vector<32x128xi1>, vector<32x128xf32>
    %cst_5 = arith.constant 1.000000e+00 : f32
    %25 = vector.broadcast %cst_5 : f32 to vector<32x128xf32>
    %26 = arith.select %16, %25, %24 : vector<32x128xi1>, vector<32x128xf32>
    %cst_6 = arith.constant dense<0.000000e+00> : vector<8x128xf32>
    %27 = tpu.matmul %3, %26, %cst_6 {dimension_numbers = #tpu.dot_dimension_numbers<[1], [0], [0], [1], [0, 0, 1, 1], [], []>, precision = #tpu.contract_precision<fp32>} : vector<8x32xf32>, vector<32x128xf32>, vector<8x128xf32> -> vector<8x128xf32>
    %28 = vector.extract_strided_slice %27 {offsets = [0, 0], sizes = [8, 1], strides = [1, 1]} : vector<8x128xf32> to vector<8x1xf32>
    %29 = vector.extract_strided_slice %27 {offsets = [0, 1], sizes = [8, 1], strides = [1, 1]} : vector<8x128xf32> to vector<8x1xf32>
    %cst_7 = arith.constant 1.000000e+00 : f32
    %30 = vector.broadcast %cst_7 : f32 to vector<8x1xf32>
    %31 = arith.divf %30, %28 : vector<8x1xf32>
    %32 = vector.broadcast %1 : i32 to vector<8x32xi32>
    %33 = arith.cmpi eq, %4, %32 : vector<8x32xi32>
    %34 = vector.broadcast %12 : vector<8x1xi32> to vector<8x32xi32>
    %35 = arith.cmpi eq, %4, %34 : vector<8x32xi32>
    %36 = vector.shape_cast %29 : vector<8x1xf32> to vector<8x1xf32>
    %37 = vector.broadcast %36 : vector<8x1xf32> to vector<8x32xf32>
    %38 = arith.select %35, %37, %3 : vector<8x32xi1>, vector<8x32xf32>
    %39 = vector.shape_cast %6 : vector<8x1xf32> to vector<8x1xf32>
    %40 = vector.broadcast %39 : vector<8x1xf32> to vector<8x32xf32>
    %41 = arith.select %33, %40, %38 : vector<8x32xi1>, vector<8x32xf32>
    %42 = vector.broadcast %31 : vector<8x1xf32> to vector<8x32xf32>
    %43 = arith.mulf %41, %42 : vector<8x32xf32>
    %c0_8 = arith.constant 0 : index
    %c0_9 = arith.constant 0 : index
    %c0_10 = arith.constant 0 : index
    %44 = vector.load %arg4[%c0_8, %c0_9, %c0_10] : memref<1x8x32xf32, #tpu.memory_space<vmem>>, vector<1x8x32xf32>
    %45 = vector.shape_cast %44 : vector<1x8x32xf32> to vector<8x32xf32>
    %46 = vector.shape_cast %43 : vector<8x32xf32> to vector<1x8x32xf32>
    tpu.vector_store %arg4[%c0_8, %c0_9, %c0_10], %46 {strides = array<i32>} : memref<1x8x32xf32, #tpu.memory_space<vmem>>, vector<1x8x32xf32>,
    return
  }
  func.func @transform_0(%arg0: i32, %arg1: i32, %arg2: memref<2xi32, #tpu.memory_space<smem>>) -> (i32, i32, i32) {
    %c0_i32 = arith.constant 0 : i32
    %c0_i32_0 = arith.constant 0 : i32
    return %arg0, %arg1, %c0_i32 : i32, i32, i32
  }
  func.func @transform_1(%arg0: i32, %arg1: i32, %arg2: memref<2xi32, #tpu.memory_space<smem>>) -> (i32, i32, i32) {
    %c0_i32 = arith.constant 0 : i32
    %c0_i32_0 = arith.constant 0 : i32
    return %arg0, %arg1, %c0_i32 : i32, i32, i32
  }
}

</mosaic_0001>

<bundles_post_ra>
// kernel: tpu_custom_call.1
= control target key start
LH: loop header
LB: loop body
LE: loop exit
PB: predicated region body
PF: predicated region fallthrough
CT: control target
= control target key end

     0   :  { %s1423_s0 = inlined_call_operand.hbm [shape: s32[2], index: 0, kind: input, shape index: {}]   ;;  %s1424_s1 = inlined_call_operand.hbm [shape: f32[2,8,32], index: 1, kind: input, shape index: {}]   ;;  %s1425_s2 = inlined_call_operand.hbm [shape: f32[2,8,32], index: 2, kind: output, shape index: {}]  }
   0x1   :  { %s1006_s11 = scalar_lea.hbm %s1423_s0, 16 }
   0x2   :  { %p1007_p0 = scmp.ne.s32.totalorder %s1423_s0, %s1006_s11  ;;  %p1010_p1 = scmp.lt.u32.totalorder %s1006_s11, %s1423_s0 }
   0x4   :  { %p1012_p2 = pnand %p1010_p1, %p1007_p0 }
   0x6   :  { %1015 = shalt.err (!%p1012_p2)  }
   0x7   :  { %s1132_s16 = smov [#allocation3]  }
   0x8   :  { %8 = dma.hbm_to_smem %s1423_s0, 16, %s1132_s16, [#allocation2] }
   0x9   :  { %1098 = dma.done.wait [#allocation2], 16 }
   0xa   :  { %1099 = vsyncadd [#allocation2], 4294967280 }
   0xb   :  { %10 = sfence }
   0xc   :  { %11 = vsyncpa [#allocation5], 0 }
   0xd   :  { %13 = vsyncpa [#allocation5 + $0x1], 0 }
   0xe   :  { %14 = vsyncpa [#allocation6], 0 }
   0xf   :  { %16 = vsyncpa [#allocation6 + $0x1], 0  ;;  %s1167_s19 = smov 0   ;;  %s1169_s20 = smov 0  }
  0x10   :  { %s1171_s21 = smov 0   ;;  %s1173_s22 = smov 0  }
  0x11   :  { %s1175_s23 = smov 0   ;;  %s1177_s24 = smov 0  }
  0x12 LB: > { %s780_s0 = sadd.s32 4294967295, %s1130_s24   ;;  %s781_s25 = sadd.s32 4294967294, %s1130_s24   ;;  %s1130_s24 = sphi %s1177_s24, %s22_s24   ;;  %s1126_s23 = sphi %s1175_s23, %s1441_s23   ;;  %s1122_s22 = sphi %s1173_s22, %s1440_s22   ;;  %s1118_s21 = sphi %s1171_s21, %s1439_s21   ;;  %s1114_s20 = sphi %s1169_s20, %s1438_s20   ;;  %s1110_s19 = sphi %s1167_s19, %s1437_s19  }
  0x13   : > { %s34_s26 = sadd.s32 1, %s1126_s23  ;;  %s43_s27 = sadd.s32 1, %s1118_s21 }
  0x14   : > { %p36_p3 = scmp.ge.s32.totalorder %s34_s26, 2  ;;  %p50_p4 = scmp.ne.s32.totalorder %s1118_s21, %s1114_s20 }
  0x15   : > { %p51_p5 = scmp.eq.s32.totalorder %s1130_s24, 0  ;;  %p56_p6 = scmp.ne.s32.totalorder %s1114_s20, %s1110_s19 }
  0x16   : > { %s1443_s26 = smov (%p36_p3, %s34_s26), 0  ;;  %p57_p8 = scmp.eq.s32.totalorder %s780_s0, 0 }
  0x17   : > { %p1208_p7 = por %p51_p5, %p50_p4  ;;  %s38_s29 = ssub.s32 %s1126_s23, %s1443_s26 }
  0x18   : > { %p82_p9 = scmp.eq.s32.totalorder %s780_s0, 1  ;;  %p41_p10 = scmp.eq.s32.totalorder %s38_s29, 0 }
  0x19   : > { %p1214_p11 = por %p57_p8, %p56_p6  ;;  %p88_p13 = scmp.eq.s32.totalorder %s781_s25, 1 }
  0x1a   : > { %p1218_p12 = por %p82_p9, %p50_p4  ;;  %p946_p2 = scmp.lt.s32.totalorder %s1130_s24, 2 }
  0x1b   : > { %s1223_s4 = scalar_select %p41_p10, %s1118_s21, %s43_s27  }
  0x1c   : > { %s1429_s3 = scalar_select %p1218_p12, 1, 0 }
  0x1d   : > { %p1225_p0 = por %p88_p13, %p56_p6  ;;  %s108_s6 = sand.u32 1, %s1118_s21  }
  0x1e   : > { %s784_s7 = sshll.u32 %s108_s6, 3  ;;  %s785_s8 = sshll.u32 %s1126_s23, 7 }
  0x1f   : > { %s1430_s5 = scalar_select %p1225_p0, 1, 0 }
  0x20   : > { %s1236_s11 = scalar_lea.hbm %s1424_s1, %s785_s8  ;;  %s112_s12 = scalar_lea.vmem [#allocation4], %s784_s7 }
  0x21   : > { %s120_s13 = sshll.u32 %s112_s12, 4  ;;  %p1242_p3 = pnand %p946_p2, %p1208_p7  ;;  %s1238_s13 = int_to_ptr.vmem [resolvable:$true] %s120_s13 }
  0x22   : > { %s109_s15 = scalar_lea.sflag [#allocation5], %s108_s6  ;;  %s1016_s16 = scalar_lea.hbm %s1236_s11, 128 }
  0x23   : > { %p1017_p6 = scmp.ne.s32.totalorder %s1236_s11, %s1016_s16  ;;  %p1018_p8 = pneg %p1242_p3 }
  0x24   : > { %s1021_s0 = scalar_lea.hbm %s1424_s1, 256  ;;  %p1022_p7 = scmp.lt.u32.totalorder %s1236_s11, %s1424_s1 }
  0x25   : > { %p1019_p9 = pnand %p1018_p8, %p1017_p6  ;;  %p1023_p13 = scmp.lt.u32.totalorder %s1021_s0, %s1016_s16 }
  0x26   : > { %p1025_p1 = scmp.lt.u32.totalorder %s1016_s16, %s1236_s11 }
  0x27   : > { %p1020_p10 = pneg %p1019_p9  ;;  %p1024_p2 = por %p1023_p13, %p1022_p7 }
  0x29   : > { %p1026_p4 = por %p1025_p1, %p1024_p2 }
  0x2b   : > { %p1027_p5 = pnand %p1026_p4, %p1020_p10 }
  0x2d   : > { %1030 = shalt.err (!%p1027_p5)
}
  0x2e   : > { %s1031_s28 = scalar_lea.vmem %s1238_s13, 128  ;;  %s1133_s29 = smov [#allocation4]  }
  0x2f   : > { %p1032_p6 = scmp.ne.s32.totalorder %s1238_s13, %s1031_s28  ;;  %s1036_s6 = sshll.u32 %s1133_s29, 4  ;;  %s1037_s6 = int_to_ptr.vmem [resolvable:$false] %s1036_s6 }
  0x30   : > { %s1038_s7 = scalar_lea.vmem %s1037_s6, 256  ;;  %p1039_p12 = scmp.lt.s32.totalorder %s1238_s13, %s1037_s6 }
  0x31   : > { %p1034_p9 = pnand %p1032_p6, %p1018_p8  ;;  %p1040_p7 = scmp.lt.s32.totalorder %s1038_s7, %s1031_s28 }
  0x33   : > { %p1035_p0 = pneg %p1034_p9  ;;  %p1041_p13 = por %p1040_p7, %p1039_p12 }
  0x35   : > { %p1042_p1 = pnand %p1041_p13, %p1035_p0 }
  0x37   : > { %1045 = shalt.err (!%p1042_p1)
}
  0x38   : > { %941 = dma.hbm_to_vmem [thread:$0]  (!%p1242_p3), %s1236_s11, 128, %s1238_s13, %s109_s15  }
  0x39   : > { %p1432_p4 = scmp.lt.s32.totalorder %s1130_s24, 3  ;;  %p1433_p5 = scmp.ge.s32.totalorder %s1130_s24, 1 }
  0x3b   : > { %p126_p8 = pnand %p1433_p5, %p1432_p4 }
  0x3c   : > { %s1278_s8 = sand.u32 (!%p126_p8), 1, %s1114_s20  }
  0x3d   : > { %129 = sbr.rel (%p126_p8) target bundleno = 530 (0x212), region = 24  ;;  %s787_s9 = sshll.u32 (!%p126_p8), %s1278_s8, 3 }
  0x3e   : > { %s132_s10 = scalar_lea.sflag (!%p126_p8), [#allocation5], %s1278_s8  ;;  %s135_s12 = scalar_lea.vmem (!%p126_p8), [#allocation4], %s787_s9 }
  0x44   : > { %1101 = dma.done.wait (%p1214_p11), %s132_s10, 128  }
  0x45   : > { %1103 = vsyncadd (%p1214_p11), %s132_s10, 4294967168  ;;  %v156_v0 = vlaneseq  ;;  %s154_s11 = sld [smem:[#allocation3 + %s1122_s22]]  ;;  %v1134_v1 = vmov 0.0|0.0   ;;  %vm1135_vm0 = vmmov 0   ;;  %v1136_v4 = vmov 0.0   ;;  %v1300_v9 = vld [vmem:[%s135_s12] sm:$0xff] }
  0x46   : > { %889 = vmatprep.subr.bf16.mxu1 %v1134_v1  ;;  %907 = vmatprep.subr.bf16.mxu0 %v1134_v1  ;;  %vm158_vm1 = vcmask 261120   ;;  %v1137_v54 = vmov 0   ;;  %v1138_v55 = vmov 1   ;;  %s790_s30 = sshll.u32 %s1122_s22, 7  ;;  %s153_s13 = scalar_lea.vmem [#allocation7], %s787_s9 }
  0x47   : > { %v1291_v2 = vand.u32 127, %v156_v0  ;;  %v180_v3 = vshrl.u32 %v156_v0, 7  ;;  %831 = vmatprep.mubr.msk.f32.mxu1 %vm1135_vm0, %v1136_v4  ;;  %864 = vmatprep.mubr.msk.f32.mxu0 %vm1135_vm0, %v1136_v4  ;;  %v159_v10 = vsel %vm158_vm1, %v1300_v9, -inf  ;;  %v204_v11 = vsel %vm158_vm1, %v1300_v9, 0  ;;  %s700_s14 = sshll.u32 %s153_s13, 4  ;;  %s1373_s17 = scalar_lea.hbm %s1425_s2, %s790_s30  ;;  %s1375_s14 = int_to_ptr.vmem [resolvable:$true] %s700_s14 }
  0x48   : > { %v1309_v12 = vand.u32 4294901760, %v204_v11  ;;  %160 = vmax.xlane.f32.xlu0 %v159_v10  ;;  %1002 = vset.pattern.permute.xlu1 %v1138_v55  ;;  %s686_s22 = scalar_lea.sflag [#allocation6], %s1278_s8  ;;  %s1046_s18 = scalar_lea.vmem %s1375_s14, 128 }
  0x49   : > { %v181_v5 = vadd.s32 8, %v180_v3  ;;  %v182_v6 = vadd.s32 16, %v180_v3  ;;  %v183_v7 = vadd.s32 24, %v180_v3  ;;  %vm185_vm2 = vcmp.eq.s32.totalorder %v1291_v2, 1  ;;  %1003 = vset.pattern.permute.xlu0 %v1137_v54  ;;  %p1047_p11 = scmp.ne.s32.totalorder %s1375_s14, %s1046_s18  ;;  %p1434_p12 = scmp.ne.s32.totalorder %s1429_s3, 0 }
  0x4a   : > { %vm184_vm3 = vcmp.eq.s32.totalorder %v1291_v2, 0  ;;  %v1319_v14 = vsub.f32 %v204_v11, %v1309_v12  ;;  %s1139_s0 = smov [#allocation7]  }
  0x4b   : > { %v1298_v8 = vstv %s154_s11  ;;  %p1048_p0 = pnand %p1047_p11, %p1434_p12  ;;  %s1050_s25 = sshll.u32 %s1139_s0, 4  ;;  %s1051_s25 = int_to_ptr.vmem [resolvable:$false] %s1050_s25 }
  0x4c   : > { %vm187_vm4 = vcmp.eq.s32.totalorder %v180_v3, %v1298_v8  ;;  %vm188_vm5 = vcmp.eq.s32.totalorder %v181_v5, %v1298_v8  ;;  %vm189_vm7 = vcmp.eq.s32.totalorder %v182_v6, %v1298_v8  ;;  %vm190_vm8 = vcmp.eq.s32.totalorder %v183_v7, %v1298_v8  ;;  %s1052_s27 = scalar_lea.vmem %s1051_s25, 256  ;;  %p1053_p10 = scmp.lt.s32.totalorder %s1375_s14, %s1051_s25 }
  0x4d   : > { %vm191_vm6 = vmand %vm185_vm2, %vm187_vm4  ;;  %v273_v27 = vand.u32 4294901760, %v1319_v14  ;;  %vm669_vm14 = vcmp.eq.s32.totalorder %v1291_v2, %v1298_v8  ;;  %p1049_p3 = pneg %p1048_p0  ;;  %p1054_p2 = scmp.lt.s32.totalorder %s1052_s27, %s1046_s18 }
  0x4e   : > { %vm192_vm9 = vmand %vm185_vm2, %vm188_vm5  ;;  %v195_v13 = vsel %vm191_vm6, 1.0, %v1136_v4 }
  0x4f   : > { %v196_v15 = vsel %vm192_vm9, 1.0, %v1136_v4  ;;  %v199_v16 = vsel %vm184_vm3, 1.0, %v195_v13  ;;  %vm193_vm10 = vmand %vm185_vm2, %vm189_vm7  ;;  %v274_v32 = vsub.f32 %v1319_v14, %v273_v27  ;;  %p1055_p6 = por %p1054_p2, %p1053_p10 }
  0x50   : > { %v200_v17 = vsel %vm184_vm3, 1.0, %v196_v15  ;;  %v282_v18 = vsub.f32 %v199_v16, %v199_v16  ;;  %vm194_vm11 = vmand %vm185_vm2, %vm190_vm8  ;;  %v197_v19 = vsel %vm193_vm10, 1.0, %v1136_v4 }
  0x51   : > { %v890_v20 = vpack.c.bf16 %v200_v17, %v199_v16  ;;  %v288_v21 = vsub.f32 %v200_v17, %v200_v17  ;;  %v198_v22 = vsel %vm194_vm11, 1.0, %v1136_v4  ;;  %v201_v23 = vsel %vm184_vm3, 1.0, %v197_v19  ;;  %p1056_p9 = pnand %p1055_p6, %p1049_p3 }
  0x52   : > { %v283_v24 = vand.u32 4294901760, %v282_v18  ;;  %v202_v25 = vsel %vm184_vm3, 1.0, %v198_v22  ;;  %v294_v26 = vsub.f32 %v201_v23, %v201_v23  ;;  %v275_v36 = vand.u32 4294901760, %v274_v32 }
  0x53   : > { %891 = vmatpush3.bf16.msra.mxu1 %v890_v20  ;;  %v289_v28 = vand.u32 4294901760, %v288_v21  ;;  %909 = vmatpush3.bf16.msra.mxu0 %v890_v20  ;;  %v893_v29 = vpack.c.bf16 %v202_v25, %v201_v23  ;;  %v300_v30 = vsub.f32 %v202_v25, %v202_v25  ;;  %v902_v47 = vpack.c.bf16 %v288_v21, %v282_v18 }
  0x54   : > { %892 = vmatprep.subr.bf16.mxu1 %v1134_v1  ;;  %910 = vmatprep.subr.bf16.mxu0 %v1134_v1  ;;  %v295_v31 = vand.u32 4294901760, %v294_v26  ;;  %v284_v33 = vsub.f32 %v282_v18, %v283_v24 }
  0x55   : > { %v301_v34 = vand.u32 4294901760, %v300_v30  ;;  %v290_v35 = vsub.f32 %v288_v21, %v289_v28  ;;  %v914_v40 = vpack.c.bf16 %v289_v28, %v283_v24  ;;  %v905_v48 = vpack.c.bf16 %v300_v30, %v294_v26 }
  0x56   : > { %v285_v37 = vand.u32 4294901760, %v284_v33  ;;  %v296_v38 = vsub.f32 %v294_v26, %v295_v31 }
  0x57   : > { %894 = vmatpush3.bf16.msra.mxu1 %v893_v29  ;;  %912 = vmatpush3.bf16.msra.mxu0 %v893_v29  ;;  %v291_v39 = vand.u32 4294901760, %v290_v35  ;;  %v302_v41 = vsub.f32 %v300_v30, %v301_v34  ;;  %v917_v46 = vpack.c.bf16 %v301_v34, %v295_v31 }
  0x58   : > { %895 = vmatprep.subr.bf16.mxu1 %v1134_v1  ;;  %913 = vmatprep.subr.bf16.mxu0 %v1134_v1  ;;  %v297_v42 = vand.u32 4294901760, %v296_v38 }
  0x59   : > { %v896_v43 = vpack.c.bf16 %v291_v39, %v285_v37  ;;  %v303_v44 = vand.u32 4294901760, %v302_v41 }
  0x5a   : > { %832 = vmatmul.mubr.f32.vlgmr.msra.gmra.mrb[0].mxu1 %v275_v36  ;;  %865 = vmatmul.mubr.f32.vlgmr.msra.gmra.mrb[0].mxu0 %v273_v27 }
  0x5b   : > { %897 = vmatpush3.bf16.msra.mxu1 %v896_v43  ;;  %915 = vmatpush3.bf16.msra.mxu0 %v914_v40  ;;  %v899_v45 = vpack.c.bf16 %v303_v44, %v297_v42 }
  0x5c   : > { %898 = vmatprep.subr.bf16.mxu1 %v1134_v1  ;;  %916 = vmatprep.subr.bf16.mxu0 %v1134_v1 }
  0x5d   : > { %842 = vmatprep.mubr.msk.f32.mxu1 %vm1135_vm0, %v1136_v4  ;;  %875 = vmatprep.mubr.msk.f32.mxu0 %vm1135_vm0, %v1136_v4 }
  0x5f   : > { %900 = vmatpush3.bf16.msra.mxu1 %v899_v45  ;;  %918 = vmatpush3.bf16.msra.mxu0 %v917_v46 }
  0x60   : > { %901 = vmatprep.subr.bf16.mxu1 %v1134_v1  ;;  %919 = vmatprep.subr.bf16.mxu0 %v1134_v1 }
  0x62   : > { %843 = vmatmul.mubr.f32.vlgmr.msra.gmra.mrb[0].mxu1 %v1309_v12  ;;  %876 = vmatmul.mubr.f32.vlgmr.msra.gmra.mrb[0].mxu0 %v1309_v12 }
  0x63   : > { %903 = vmatpush3.bf16.msra.mxu1 %v902_v47  ;;  %921 = vmatpush3.bf16.msra.mxu0 %v890_v20 }
  0x64   : > { %904 = vmatprep.subr.bf16.mxu1 %v1134_v1  ;;  %922 = vmatprep.subr.bf16.mxu0 %v1134_v1 }
  0x65   : > { %853 = vmatprep.mubr.msk.f32.mxu1 %vm1135_vm0, %v1136_v4  ;;  %886 = vmatprep.mubr.msk.f32.mxu0 %vm1135_vm0, %v1136_v4 }
  0x67   : > { %906 = vmatpush3.bf16.msra.mxu1 %v905_v48  ;;  %924 = vmatpush3.bf16.msra.mxu0 %v893_v29 }
  0x6a   : > { %854 = vmatmul.mubr.f32.vlgmr.msra.gmra.mrb[0].mxu1 %v1319_v14  ;;  %887 = vmatmul.mubr.f32.vlgmr.msra.gmra.mrb[0].mxu0 %v1309_v12 }
  0xd5   : > { %v161_v49 = vpop.xlane.xlu0 %160 }
  0xd6   : > { %vm162_vm12 = vcmp.eq.f32.partialorder %v1300_v9, %v161_v49 }
  0xd7   : > { %v163_v50 = vsel %vm162_vm12, %v1291_v2, 32 }
  0xd8   : > { %v164_v51 = vsel %vm158_vm1, %v163_v50, 2147483647 }
  0xd9   : > { %v166_v52 = vshra.s32 %v164_v51, 16  ;;  %v165_v62 = vand.u32 65535, %v164_v51 }
  0xdb   : > { %v168_v53 = vcvt.s32.f32 %v166_v52  ;;  %v167_v0 = vcvt.s32.f32 %v165_v62 }
  0xdd   : > { %169 = vmin.xlane.f32.xlu0 %v168_v53 }
 0x13d   : > { %v440_v56 = vpop.f32.mrb[0].mxu1  ;;  %v663_v57 = vpop.f32.mrb[0].mxu0 }
 0x13e   : > { %v925_v58 = vadd.f32 %v663_v57, %v440_v56  ;;  %v855_v59 = vpop.f32.mrb[1].mxu1  ;;  %v888_v60 = vpop.f32.mrb[1].mxu0 }
 0x140   : > { %1004 = vrcp.f32 %v925_v58 }
 0x14a   : > { %v1005_v61 = vpop.eup %1004 }
 0x14b   : > { %680 = vperm.xlu0 %1003, %v1005_v61  }
 0x16a   : > { %v170_v63 = vpop.xlane.xlu0 %169 }
 0x16b   : > { %vm171_vm13 = vcmp.eq.f32.partialorder %v168_v53, %v170_v63  ;;  %v176_v3 = vcvt.f32.s32 %v170_v63 }
 0x16c   : > { %v172_v1 = vsel %vm171_vm13, %v167_v0, inf }
 0x16d   : > { %173 = vmin.xlane.f32.xlu1 %v172_v1  ;;  %v177_v5 = vshll.u32 %v176_v3, 16 }
 0x17e   : > { %673 = vperm.xlu1 %1002, %v925_v58  }
 0x1ca   : > { %v681_v12 = vpop.permute.xlu0 %680 }
 0x1fa   : > { %v174_v4 = vpop.xlane.xlu1 %173 }
 0x1fb   : > { %v175_v6 = vcvt.f32.s32 %v174_v4 }
 0x1fd   : > { %v178_v7 = vadd.s32 %v177_v5, %v175_v6 }
 0x1fe   : > { %v674_v10 = vpop.permute.xlu1 %673 }
 0x1ff   : > { %vm670_vm15 = vcmp.eq.s32.totalorder %v1291_v2, %v178_v7 }
 0x200   : > { %v676_v11 = vsel %vm670_vm15, %v674_v10, %v1300_v9 }
 0x201   : > { %v677_v13 = vsel %vm669_vm14, %v161_v49, %v676_v11 }
 0x202   : > { %v683_v14 = vmul.f32 %v681_v12, %v677_v13 }
 0x204   : > { %684 = vst.msk [vmem:[%s153_s13] sm:$0xff] %vm158_vm1, %v683_v14 }
 0x205   : > { %1059 = shalt.err (!%p1056_p9)
}
 0x206   : > { %s1060_s28 = scalar_lea.hbm %s1373_s17, 128  ;;  %s1064_s7 = scalar_lea.hbm %s1425_s2, 256 }
 0x207   : > { %p1061_p7 = scmp.ne.s32.totalorder %s1373_s17, %s1060_s28  ;;  %p1065_p4 = scmp.lt.u32.totalorder %s1373_s17, %s1425_s2 }
 0x208   : > { %p1066_p5 = scmp.lt.u32.totalorder %s1064_s7, %s1060_s28  ;;  %p1068_p11 = scmp.lt.u32.totalorder %s1060_s28, %s1373_s17 }
 0x209   : > { %p1062_p13 = pnand %p1061_p7, %p1434_p12 }
 0x20a   : > { %p1067_p8 = por %p1066_p5, %p1065_p4 }
 0x20b   : > { %p1063_p1 = pneg %p1062_p13 }
 0x20c   : > { %p1069_p0 = por %p1068_p11, %p1067_p8 }
 0x20e   : > { %p1070_p3 = pnand %p1069_p0, %p1063_p1 }
 0x210   : > { %1073 = shalt.err (!%p1070_p3)
}
 0x211   : > { %936 = dma.vmem_to_hbm [thread:$0]  (%p1434_p12), %s1375_s14, 128, %s1373_s17, %s686_s22  }
 0x212 PF: > { %s712_s10 = sand.u32 1, %s1110_s19   ;;  %p1435_p10 = scmp.ne.s32.totalorder %s1430_s5, 0 }
 0x213   : > { %p1436_p2 = scmp.ge.s32.totalorder %s1130_s24, 2  ;;  %s713_s12 = scalar_lea.sflag [#allocation6], %s712_s10 }
 0x215   : > { %p943_p6 = pnand %p1436_p2, %p1435_p10 }
 0x217   : > { %1105 = dma.done.wait (!%p943_p6), %s713_s12, 128  }
 0x218   : > { %1107 = vsyncadd (!%p943_p6), %s713_s12, 4294967168  ;;  %s22_s24 = sadd.s32 1, %s1130_s24   ;;  %s1437_s19 = smov %s1114_s20 }
 0x219   : > { %p19_p9 = scmp.ge.s32.totalorder %s22_s24, 4   ;;  %s1438_s20 = smov %s1118_s21 }
 0x21a   : > { %s1439_s21 = smov %s1223_s4  ;;  %s1440_s22 = smov %s1126_s23 }
 0x21b   : > { %s1441_s23 = smov %s1443_s26  ;;  %21 = sbr.rel (!%p19_p9) target bundleno = 18 (0x12), region = 69 }
 0x222   :  { %718 = vsyncpa [#allocation5], 1 }
 0x223   :  { %720 = vsyncpa [#allocation5 + $0x1], 1 }
 0x224   :  { %721 = vsyncpa [#allocation6], 1 }
 0x225   :  { %723 = vsyncpa [#allocation6 + $0x1], 1 }

</bundles_post_ra>
